<compile_context>
chip_gen: v7x
topology: tpu7x:2x2x1
jax: 0.10.0
libtpu: 0.0.40
codegen_flags: <defaults>
</compile_context>

<pallas_src>
import functools

import jax
import jax.numpy as jnp
from jax.experimental import pallas as pl
from jax.experimental.pallas import tpu as pltpu

EXPONENT = 2.718281828  # matches torch default exponent=tensor(2.718281828)

_LANE = 128                    # TPU vreg lane width
_MAX_TILE_ROWS = 64            # 64 rows x 128 lanes = 8192 columns per block
_MAX_UNALIGNED_SINGLE_BLOCK = 1 << 17  # non-128-aligned batches up to this stay single-block


def _soft_mode_kernel(x_ref, o_ref, *, exponent: float):
    # x_ref / o_ref: (n_modes, batch_tile) or (n_modes, rows_tile, 128) in VMEM.
    x = x_ref[...].astype(jnp.float32)
    # x ** e -> exp(e*log(x)) on the EUP slot.
    p = jnp.power(x, jnp.float32(exponent))
    # Reduce over the leading mode axis (per-column sum).
    s = jnp.sum(p, axis=0, keepdims=True)
    # Approx EUP reciprocal + one Newton-Raphson step (2 VPU ops): ~2^-24 rel error.
    r = pl.reciprocal(s, approx=True)
    r = r * (2.0 - s * r)
    o_ref[...] = (p * r).astype(o_ref.dtype)


def _cost(n_modes: int, batch: int) -> pl.CostEstimate:
    n = n_modes * batch
    return pl.CostEstimate(
        flops=5 * n,                      # mul for e*log(x), sum, NR, broadcast mul
        transcendentals=2 * n + batch,    # exp+log per element, one rcp per column
        bytes_accessed=2 * n * 4,         # read + write, f32
    )


def _single_block_call(x: jax.Array, exponent: float) -> jax.Array:
    """Whole-array block, no grid, no pad/slice. Works for 2-D or 3-D x."""
    n_modes = x.shape[0]
    batch = x.size // n_modes
    kernel = functools.partial(_soft_mode_kernel, exponent=exponent)
    return pl.pallas_call(
        kernel,
        out_shape=jax.ShapeDtypeStruct(x.shape, jnp.float32),
        in_specs=[pl.BlockSpec(memory_space=pltpu.MemorySpace.VMEM)],
        out_specs=pl.BlockSpec(memory_space=pltpu.MemorySpace.VMEM),
        cost_estimate=_cost(n_modes, batch),
    )(x)


def _tiled_call(x3: jax.Array, tile_rows: int, exponent: float) -> jax.Array:
    """1-D grid over rows-of-128, lane-dense (n_modes, tile_rows, 128) blocks."""
    n_modes, rows, lane = x3.shape
    kernel = functools.partial(_soft_mode_kernel, exponent=exponent)
    grid = (pl.cdiv(rows, tile_rows),)
    return pl.pallas_call(
        kernel,
        out_shape=jax.ShapeDtypeStruct(x3.shape, jnp.float32),
        grid=grid,
        in_specs=[pl.BlockSpec((n_modes, tile_rows, lane), lambda i: (0, i, 0))],
        out_specs=pl.BlockSpec((n_modes, tile_rows, lane), lambda i: (0, i, 0)),
        compiler_params=pltpu.CompilerParams(
            dimension_semantics=("parallel",),
        ),
        cost_estimate=_cost(n_modes, rows * lane),
    )(x3)


def _run_aligned(x: jax.Array, exponent: float) -> jax.Array:
    """batch % 128 == 0 path: dense 3-D layout, single block or wide tiles."""
    n_modes, batch = x.shape
    rows = batch // _LANE
    x3 = x.reshape(n_modes, rows, _LANE)  # free: row-major contiguous
    if rows <= _MAX_TILE_ROWS:
        out3 = _single_block_call(x3, exponent)
    else:
        out3 = _tiled_call(x3, _MAX_TILE_ROWS, exponent)
    return out3.reshape(n_modes, batch)


def soft_mode_selector(params: jax.Array, exponent: float = EXPONENT) -> jax.Array:
    """params: (n_modes, batch_size) float32 in [0, 1]. Returns weights of the same
    shape where each batch column sums to 1 over the mode axis.  All-zero columns
    produce NaN (0/0), matching the torch reference."""
    n_modes, batch = params.shape
    x = params.astype(jnp.float32)

    if batch % _LANE == 0:
        return _run_aligned(x, exponent)

    if batch <= _MAX_UNALIGNED_SINGLE_BLOCK:
        # Realistic torchsynth batches: one block, zero extra HBM passes.
        return _single_block_call(x, exponent)

    # Rare: huge and non-128-aligned. Pad only to the next multiple of 128
    # (<= 127 wasted columns), run the dense path, slice back.
    padded = pl.cdiv(batch, _LANE) * _LANE
    xp = jnp.pad(x, ((0, 0), (0, padded - batch)), constant_values=1.0)
    return _run_aligned(xp, exponent)[:, :batch]


def _reference(params: jax.Array, exponent: float = EXPONENT) -> jax.Array:
    p = jnp.power(params.astype(jnp.float32), exponent)
    return p / jnp.sum(p, axis=0, keepdims=True)


# TODO(synk): parameter registration / SynthConfig plumbing (nn.ParameterDict etc.)
# has no Pallas equivalent; only the forward-pass math is implemented here.

if __name__ == "__main__":
    key = jax.random.PRNGKey(0)

    def check(n_modes, batch, subkey):
        params = jax.random.uniform(subkey, (n_modes, batch), dtype=jnp.float32)
        out = jax.block_until_ready(soft_mode_selector(params))
        ref = _reference(params)
        assert out.shape == (n_modes, batch)
        assert jnp.allclose(out, ref, atol=1e-5, rtol=1e-5)
        assert jnp.allclose(jnp.sum(out, axis=0), jnp.ones((batch,)), atol=1e-5)

    k0, k1, k2, k3 = jax.random.split(key, 4)

    # Typical SoftModeSelector config: n_modes=4, batch=64 -> single-block path.
    check(4, 64, k0)
    # Non-128-aligned batch -> single-block full-array path (no pad/slice).
    check(4, 1000, k1)
    # 128-aligned batch -> dense 3-D single-block path.
    check(6, 4096, k2)
    # Wide batch -> tiled 3-D path (rows=128 > 64, grid of 2 parallel steps).
    check(4, 16384, k3)

    print("KERNEL_OK")
</pallas_src>

<mosaic_0001>
module attributes {stable_mosaic.version = 11 : i64} {
  func.func @_soft_mode_kernel(%arg0: memref<4x64xf32, #tpu.memory_space<vmem>>, %arg1: memref<4x64xf32, #tpu.memory_space<vmem>>) attributes {dimension_semantics = [], scalar_prefetch = 0 : i64, scratch_operands = 0 : i64, tpu.core_type = #tpu.core_type<tc>} {
    %c0 = arith.constant 0 : index
    %c0_0 = arith.constant 0 : index
    %0 = vector.load %arg0[%c0, %c0_0] : memref<4x64xf32, #tpu.memory_space<vmem>>, vector<4x64xf32>
    %cst = arith.constant 2.71828175 : f32
    %1 = vector.broadcast %cst : f32 to vector<4x64xf32>
    %2 = math.powf %0, %1 : vector<4x64xf32>
    %cst_1 = arith.constant dense<0.000000e+00> : vector<64xf32>
    %3 = vector.multi_reduction <add>, %2, %cst_1 [0] : vector<4x64xf32> to vector<64xf32>
    %4 = vector.shape_cast %3 : vector<64xf32> to vector<1x64xf32>
    %5 = tpu.reciprocal %4 {approx = true} : vector<1x64xf32> -> vector<1x64xf32>
    %6 = arith.mulf %4, %5 : vector<1x64xf32>
    %cst_2 = arith.constant 2.000000e+00 : f32
    %7 = vector.broadcast %cst_2 : f32 to vector<1x64xf32>
    %8 = arith.subf %7, %6 : vector<1x64xf32>
    %9 = arith.mulf %5, %8 : vector<1x64xf32>
    %10 = vector.broadcast %9 : vector<1x64xf32> to vector<4x64xf32>
    %11 = arith.mulf %2, %10 : vector<4x64xf32>
    %c0_3 = arith.constant 0 : index
    %c0_4 = arith.constant 0 : index
    %12 = vector.load %arg1[%c0_3, %c0_4] : memref<4x64xf32, #tpu.memory_space<vmem>>, vector<4x64xf32>
    tpu.vector_store %arg1[%c0_3, %c0_4], %11 {strides = array<i32>} : memref<4x64xf32, #tpu.memory_space<vmem>>, vector<4x64xf32>,
    return
  }
}

</mosaic_0001>

<bundles_post_ra>
// kernel: tpu_custom_call.1
= control target key start
LH: loop header
LB: loop body
LE: loop exit
PB: predicated region body
PF: predicated region fallthrough
CT: control target
= control target key end

     0   :  { %6 = vsyncpa [#allocation3], 0  ;;  %s172_s0 = inlined_call_operand.hbm [shape: f32[4,64], index: 0, kind: input, shape index: {}]   ;;  %s173_s1 = inlined_call_operand.hbm [shape: f32[4,64], index: 1, kind: output, shape index: {}]  }
   0x1   :  { %7 = vsyncpa [#allocation4], 0  ;;  %s134_s6 = smov [#allocation2]   ;;  %s86_s10 = scalar_lea.hbm %s172_s0, 64 }
   0x2   :  { %s14_s7 = sshll.u32 %s134_s6, 4  ;;  %p87_p0 = scmp.ne.s32.totalorder %s172_s0, %s86_s10  ;;  %s15_s7 = int_to_ptr.vmem [resolvable:$true] %s14_s7 }
   0x3   :  { %p90_p1 = scmp.lt.u32.totalorder %s86_s10, %s172_s0 }
   0x5   :  { %p92_p2 = pnand %p90_p1, %p87_p0 }
   0x7   :  { %95 = shalt.err (!%p92_p2)
}
   0x8   :  { %s96_s15 = scalar_lea.vmem %s15_s7, 64  ;;  %p101_p4 = scmp.lt.s32.totalorder %s15_s7, %s15_s7 }
   0x9   :  { %p97_p3 = scmp.ne.s32.totalorder %s15_s7, %s96_s15  ;;  %p102_p5 = scmp.lt.s32.totalorder %s96_s15, %s96_s15 }
   0xb   :  { %p103_p6 = por %p102_p5, %p101_p4 }
   0xd   :  { %p104_p7 = pnand %p103_p6, %p97_p3 }
   0xf   :  { %107 = shalt.err (!%p104_p7)
}
  0x10   :  { %17 = dma.hbm_to_vmem [thread:$0]  %s172_s0, 64, %s15_s7, [#allocation3]  }
  0x11   :  { %130 = dma.done.wait [#allocation3], 64  }
  0x12   :  { %131 = vsyncadd [#allocation3], 4294967232  ;;  %v21_v0 = vld [vmem:[#allocation2] sm:$0xf]  ;;  %vm23_vm5 = vcmask 519168   ;;  %s135_s0 = smov [#allocation5]  }
  0x13   :  { %v56_v1 = vand.u32 2147483647, %v21_v0  ;;  %vm60_vm0 = vcmp.lt.f32.partialorder %v21_v0, 0  ;;  %vm61_vm1 = vcmp.eq.f32.partialorder %v21_v0, 0  ;;  %vm73_vm3 = vcmp.ne.f32.partialorder %v21_v0, %v21_v0  ;;  %s43_s18 = sshll.u32 %s135_s0, 4  ;;  %s44_s18 = int_to_ptr.vmem [resolvable:$true] %s43_s18 }
  0x14   :  { %vm62_vm4 = vcmp.eq.f32.partialorder %v21_v0, 1065353216  ;;  %s108_s19 = scalar_lea.vmem %s44_s18, 64  ;;  %p113_p9 = scmp.lt.s32.totalorder %s44_s18, %s44_s18 }
  0x15   :  { %80 = vlog2.f32 %v56_v1  ;;  %vm65_vm2 = vcmp.eq.f32.partialorder %v56_v1, 2139095040  ;;  %p109_p8 = scmp.ne.s32.totalorder %s44_s18, %s108_s19  ;;  %p114_p10 = scmp.lt.s32.totalorder %s108_s19, %s108_s19 }
  0x17   :  { %p115_p11 = por %p114_p10, %p113_p9 }
  0x19   :  { %p116_p12 = pnand %p115_p11, %p109_p8 }
  0x1f   :  { %v81_v2 = vpop.eup %80 }
  0x20   :  { %v58_v3 = vmul.f32 2.7182817, %v81_v2 }
  0x22   :  { %82 = vpow2.f32 %v58_v3 }
  0x2c   :  { %v83_v4 = vpop.eup %82 }
  0x2d   :  { %v66_v5 = vsel %vm60_vm0, 2143289344, %v83_v4 }
  0x2e   :  { %v67_v6 = vsel %vm61_vm1, 0, %v66_v5 }
  0x2f   :  { %v72_v7 = vsel %vm65_vm2, 2139095040, %v67_v6 }
  0x30   :  { %v76_v8 = vsel %vm73_vm3, 2143289344, %v72_v7 }
  0x31   :  { %v77_v9 = vsel %vm62_vm4, 1065353216, %v76_v8 }
  0x32   :  { %v24_v10 = vsel %vm23_vm5, %v77_v9, 0.0 }
  0x33   :  { %v25_v11 = vrot.slane %v24_v10, 4 }
  0x35   :  { %v26_v12 = vadd.f32 %v25_v11, %v24_v10 }
  0x37   :  { %v27_v13 = vrot.slane %v26_v12, 2 }
  0x39   :  { %v28_v14 = vadd.f32 %v27_v13, %v26_v12 }
  0x3b   :  { %v29_v15 = vrot.slane %v28_v14, 1 }
  0x3d   :  { %v30_v16 = vadd.f32 %v29_v15, %v28_v14 }
  0x3f   :  { %84 = vrcp.f32 %v30_v16 }
  0x49   :  { %v85_v17 = vpop.eup %84 }
  0x4a   :  { %v32_v18 = vmul.f32 %v85_v17, %v30_v16 }
  0x4c   :  { %v33_v19 = vsub.f32 2.0, %v32_v18 }
  0x4e   :  { %v34_v20 = vmul.f32 %v85_v17, %v33_v19 }
  0x50   :  { %v35_v21 = vmul.f32 %v77_v9, %v34_v20 }
  0x52   :  { %36 = vst.msk [vmem:[#allocation5] sm:$0xf] %vm23_vm5, %v35_v21 }
  0x53   :  { %119 = shalt.err (!%p116_p12)
}
  0x54   :  { %s120_s22 = scalar_lea.hbm %s173_s1, 64 }
  0x55   :  { %p121_p13 = scmp.ne.s32.totalorder %s173_s1, %s120_s22  ;;  %p124_p0 = scmp.lt.u32.totalorder %s120_s22, %s173_s1 }
  0x57   :  { %p126_p1 = pnand %p124_p0, %p121_p13 }
  0x59   :  { %129 = shalt.err (!%p126_p1)
}
  0x5a   :  { %46 = dma.vmem_to_hbm [thread:$0]  %s44_s18, 64, %s173_s1, [#allocation4]  }
  0x5b   :  { %132 = dma.done.wait [#allocation4], 64  }
  0x5c   :  { %133 = vsyncadd [#allocation4], 4294967232 }
  0x5d   :  { %50 = vsyncpa [#allocation3], 1 }
  0x5e   :  { %51 = vsyncpa [#allocation4], 1 }

</bundles_post_ra>
